<compile_context>
chip_gen: v7x
topology: tpu7x:2x2x1
jax: 0.10.0
libtpu: 0.0.40
codegen_flags: <defaults>
</compile_context>

<pallas_src>
import functools

import jax
import jax.numpy as jnp
from jax.experimental import pallas as pl

LANE = 128


def _round_up(n, m):
    return ((n + m - 1) // m) * m


def _full_spec(shape):
    # Whole-array block: satisfies the (8,128) rule by covering full dims.
    return pl.BlockSpec(shape, lambda: (0,) * len(shape))


# ----------------------------------------------------------------------------
# Fused Pallas kernel: all layers in one body, everything resident in VMEM.
# ----------------------------------------------------------------------------
def _fused_mlp_kernel(*refs, num_layers, has_classifier, activation):
    # refs = [x, w0, b0, ..., w_{L-1}, b_{L-1}, w_s, b_s, (w_c, b_c)?,
    #         out, (logits)?]
    n_pairs = num_layers + 1 + (1 if has_classifier else 0)
    x_ref = refs[0]
    wb = refs[1:1 + 2 * n_pairs]
    outs = refs[1 + 2 * n_pairs:]

    x_bf = x_ref[...].astype(jnp.bfloat16)            # (B, Din_pad) bf16

    # --- net: chained Linear + activation, unrolled (num_layers is static) ---
    h_bf = x_bf
    h_f32 = None
    for layer in range(num_layers):
        w = wb[2 * layer][...]                         # bf16 (K_pad, H_pad)
        b = wb[2 * layer + 1][...]                     # f32  (1, H_pad)
        y = jnp.dot(h_bf, w, preferred_element_type=jnp.float32) + b
        if activation == "relu":
            y = jnp.maximum(y, 0.0)
        h_f32 = y                                      # keep f32 for residual
        h_bf = y.astype(jnp.bfloat16)                  # bf16 feed to next MXU

    # --- shortcut: Linear(input_dim, hidden_dim) on the original input ------
    w_s = wb[2 * num_layers][...]
    b_s = wb[2 * num_layers + 1][...]
    short = jnp.dot(x_bf, w_s, preferred_element_type=jnp.float32) + b_s

    out = h_f32 + short                                # residual add, f32
    outs[0][...] = out.astype(outs[0].dtype)

    # --- optional classifier -------------------------------------------------
    if has_classifier:
        w_c = wb[2 * num_layers + 2][...]
        b_c = wb[2 * num_layers + 3][...]
        logits = jnp.dot(out.astype(jnp.bfloat16), w_c,
                         preferred_element_type=jnp.float32) + b_c
        outs[1][...] = logits.astype(outs[1].dtype)


# ----------------------------------------------------------------------------
# Parameter init (PyTorch-Linear-style uniform(-1/sqrt(fan_in))) -- logical
# (unpadded, f32) params; packing/padding to lane-dense bf16 happens once in
# pack_params().
# ----------------------------------------------------------------------------
def _init_linear(key, fan_in, fan_out):
    kw, kb = jax.random.split(key)
    bound = 1.0 / jnp.sqrt(jnp.float32(fan_in))
    w = jax.random.uniform(kw, (fan_in, fan_out), jnp.float32, -bound, bound)
    b = jax.random.uniform(kb, (fan_out,), jnp.float32, -bound, bound)
    return w, b


def init_mlp_params(key, input_dim, hidden_dim, num_layers, n_classes=0):
    assert num_layers >= 1
    keys = jax.random.split(key, num_layers + 2)
    params = {"net": [], "shortcut": None, "classifier": None}
    dims = [input_dim] + [hidden_dim] * num_layers
    for i in range(num_layers):
        params["net"].append(_init_linear(keys[i], dims[i], dims[i + 1]))
    params["shortcut"] = _init_linear(keys[num_layers], input_dim, hidden_dim)
    if n_classes != 0:
        params["classifier"] = _init_linear(keys[num_layers + 1],
                                            hidden_dim, n_classes)
    return params


def _pad_wb(w, b, k_pad, n_pad):
    """Zero-pad a Linear's (w, b) to lane-dense shapes; w -> bf16, b -> f32."""
    fan_in, fan_out = w.shape
    w_p = jnp.zeros((k_pad, n_pad), jnp.float32).at[:fan_in, :fan_out].set(w)
    b_p = jnp.zeros((1, n_pad), jnp.float32).at[0, :fan_out].set(b)
    return w_p.astype(jnp.bfloat16), b_p


def pack_params(params, input_dim, hidden_dim, n_classes):
    """Flatten + zero-pad all weights/biases to 128-lane multiples (one-time)."""
    din_p = _round_up(input_dim, LANE)
    hid_p = _round_up(hidden_dim, LANE)
    cls_p = _round_up(max(n_classes, 1), LANE)

    flat = []
    dims_in = [input_dim] + [hidden_dim] * (len(params["net"]) - 1)
    pads_in = [din_p] + [hid_p] * (len(params["net"]) - 1)
    for (w, b), _, k_pad in zip(params["net"], dims_in, pads_in):
        flat.extend(_pad_wb(w, b, k_pad, hid_p))
    w_s, b_s = params["shortcut"]
    flat.extend(_pad_wb(w_s, b_s, din_p, hid_p))
    if params["classifier"] is not None:
        w_c, b_c = params["classifier"]
        flat.extend(_pad_wb(w_c, b_c, hid_p, cls_p))
    return flat, (din_p, hid_p, cls_p)


# ----------------------------------------------------------------------------
# Forward: single fused pallas_call over lane-padded operands.
# ----------------------------------------------------------------------------
def mlp_forward_pallas(packed, pads, x, *, num_layers, hidden_dim, n_classes,
                       activation="relu"):
    din_p, hid_p, cls_p = pads
    B, input_dim = x.shape
    has_classifier = n_classes != 0

    # Lane-pad the input once (zeros hit zero weight rows -> exact).
    x_p = jnp.zeros((B, din_p), jnp.float32).at[:, :input_dim].set(x)

    kernel = functools.partial(_fused_mlp_kernel, num_layers=num_layers,
                               has_classifier=has_classifier,
                               activation=activation)

    in_specs = [_full_spec((B, din_p))]
    for arr in packed:
        in_specs.append(_full_spec(arr.shape))

    out_shapes = [jax.ShapeDtypeStruct((B, hid_p), jnp.float32)]
    out_specs = [_full_spec((B, hid_p))]
    if has_classifier:
        out_shapes.append(jax.ShapeDtypeStruct((B, cls_p), jnp.float32))
        out_specs.append(_full_spec((B, cls_p)))

    results = pl.pallas_call(
        kernel,
        out_shape=tuple(out_shapes),
        in_specs=in_specs,
        out_specs=tuple(out_specs),
    )(x_p, *packed)

    out = results[0][:, :hidden_dim]
    if has_classifier:
        return out, results[1][:, :n_classes]
    return out


# ----------------------------------------------------------------------------
# Pure-JAX reference with identical precision (bf16 MXU inputs, f32 accum).
# ----------------------------------------------------------------------------
def _ref_linear(x, w, b):
    return jnp.dot(x.astype(jnp.bfloat16), w.astype(jnp.bfloat16),
                   preferred_element_type=jnp.float32) + b


def mlp_forward_ref(params, x):
    h = x
    for (w, b) in params["net"]:
        h = jnp.maximum(_ref_linear(h, w, b), 0.0)
    w_s, b_s = params["shortcut"]
    out = h + _ref_linear(x, w_s, b_s)
    if params["classifier"] is not None:
        w_c, b_c = params["classifier"]
        return out, _ref_linear(out, w_c, b_c)
    return out


if __name__ == "__main__":
    key = jax.random.PRNGKey(0)
    k_param, k_x = jax.random.split(key)

    batch = 8
    input_dim = 32
    hidden_dim = 32
    num_layers = 3
    n_classes = 10

    params = init_mlp_params(k_param, input_dim, hidden_dim, num_layers,
                             n_classes=n_classes)
    packed, pads = pack_params(params, input_dim, hidden_dim, n_classes)
    x = jax.random.normal(k_x, (batch, input_dim), jnp.float32)

    out, logits = mlp_forward_pallas(packed, pads, x, num_layers=num_layers,
                                     hidden_dim=hidden_dim,
                                     n_classes=n_classes, activation="relu")
    out = jax.block_until_ready(out)
    logits = jax.block_until_ready(logits)

    ref_out, ref_logits = mlp_forward_ref(params, x)
    assert out.shape == (batch, hidden_dim)
    assert logits.shape == (batch, n_classes)
    assert jnp.allclose(out, ref_out, atol=1e-3, rtol=1e-3)
    assert jnp.allclose(logits, ref_logits, atol=1e-3, rtol=1e-3)

    print("KERNEL_OK")
</pallas_src>

<mosaic_0001>
module attributes {stable_mosaic.version = 11 : i64} {
  func.func @_fused_mlp_kernel(%arg0: memref<8x128xf32, #tpu.memory_space<vmem>>, %arg1: memref<128x128xbf16, #tpu.memory_space<vmem>>, %arg2: memref<1x128xf32, #tpu.memory_space<vmem>>, %arg3: memref<128x128xbf16, #tpu.memory_space<vmem>>, %arg4: memref<1x128xf32, #tpu.memory_space<vmem>>, %arg5: memref<128x128xbf16, #tpu.memory_space<vmem>>, %arg6: memref<1x128xf32, #tpu.memory_space<vmem>>, %arg7: memref<128x128xbf16, #tpu.memory_space<vmem>>, %arg8: memref<1x128xf32, #tpu.memory_space<vmem>>, %arg9: memref<128x128xbf16, #tpu.memory_space<vmem>>, %arg10: memref<1x128xf32, #tpu.memory_space<vmem>>, %arg11: memref<8x128xf32, #tpu.memory_space<vmem>>, %arg12: memref<8x128xf32, #tpu.memory_space<vmem>>) attributes {dimension_semantics = [], scalar_prefetch = 0 : i64, scratch_operands = 0 : i64, tpu.core_type = #tpu.core_type<tc>} {
    %c0 = arith.constant 0 : index
    %c0_0 = arith.constant 0 : index
    %0 = vector.load %arg0[%c0, %c0_0] : memref<8x128xf32, #tpu.memory_space<vmem>>, vector<8x128xf32>
    %1 = arith.truncf %0 : vector<8x128xf32> to vector<8x128xbf16>
    %c0_1 = arith.constant 0 : index
    %c0_2 = arith.constant 0 : index
    %2 = vector.load %arg1[%c0_1, %c0_2] : memref<128x128xbf16, #tpu.memory_space<vmem>>, vector<128x128xbf16>
    %c0_3 = arith.constant 0 : index
    %c0_4 = arith.constant 0 : index
    %3 = vector.load %arg2[%c0_3, %c0_4] : memref<1x128xf32, #tpu.memory_space<vmem>>, vector<1x128xf32>
    %cst = arith.constant dense<0.000000e+00> : vector<8x128xf32>
    %4 = tpu.matmul %1, %2, %cst {dimension_numbers = #tpu.dot_dimension_numbers<[1], [0], [0], [1], [0, 0, 1, 1], [], []>} : vector<8x128xbf16>, vector<128x128xbf16>, vector<8x128xf32> -> vector<8x128xf32>
    %5 = vector.broadcast %3 : vector<1x128xf32> to vector<8x128xf32>
    %6 = arith.addf %4, %5 : vector<8x128xf32>
    %cst_5 = arith.constant 0.000000e+00 : f32
    %7 = vector.broadcast %cst_5 : f32 to vector<8x128xf32>
    %8 = arith.maximumf %6, %7 : vector<8x128xf32>
    %9 = arith.truncf %8 : vector<8x128xf32> to vector<8x128xbf16>
    %c0_6 = arith.constant 0 : index
    %c0_7 = arith.constant 0 : index
    %10 = vector.load %arg3[%c0_6, %c0_7] : memref<128x128xbf16, #tpu.memory_space<vmem>>, vector<128x128xbf16>
    %c0_8 = arith.constant 0 : index
    %c0_9 = arith.constant 0 : index
    %11 = vector.load %arg4[%c0_8, %c0_9] : memref<1x128xf32, #tpu.memory_space<vmem>>, vector<1x128xf32>
    %cst_10 = arith.constant dense<0.000000e+00> : vector<8x128xf32>
    %12 = tpu.matmul %9, %10, %cst_10 {dimension_numbers = #tpu.dot_dimension_numbers<[1], [0], [0], [1], [0, 0, 1, 1], [], []>} : vector<8x128xbf16>, vector<128x128xbf16>, vector<8x128xf32> -> vector<8x128xf32>
    %13 = vector.broadcast %11 : vector<1x128xf32> to vector<8x128xf32>
    %14 = arith.addf %12, %13 : vector<8x128xf32>
    %cst_11 = arith.constant 0.000000e+00 : f32
    %15 = vector.broadcast %cst_11 : f32 to vector<8x128xf32>
    %16 = arith.maximumf %14, %15 : vector<8x128xf32>
    %17 = arith.truncf %16 : vector<8x128xf32> to vector<8x128xbf16>
    %c0_12 = arith.constant 0 : index
    %c0_13 = arith.constant 0 : index
    %18 = vector.load %arg5[%c0_12, %c0_13] : memref<128x128xbf16, #tpu.memory_space<vmem>>, vector<128x128xbf16>
    %c0_14 = arith.constant 0 : index
    %c0_15 = arith.constant 0 : index
    %19 = vector.load %arg6[%c0_14, %c0_15] : memref<1x128xf32, #tpu.memory_space<vmem>>, vector<1x128xf32>
    %cst_16 = arith.constant dense<0.000000e+00> : vector<8x128xf32>
    %20 = tpu.matmul %17, %18, %cst_16 {dimension_numbers = #tpu.dot_dimension_numbers<[1], [0], [0], [1], [0, 0, 1, 1], [], []>} : vector<8x128xbf16>, vector<128x128xbf16>, vector<8x128xf32> -> vector<8x128xf32>
    %21 = vector.broadcast %19 : vector<1x128xf32> to vector<8x128xf32>
    %22 = arith.addf %20, %21 : vector<8x128xf32>
    %cst_17 = arith.constant 0.000000e+00 : f32
    %23 = vector.broadcast %cst_17 : f32 to vector<8x128xf32>
    %24 = arith.maximumf %22, %23 : vector<8x128xf32>
    %c0_18 = arith.constant 0 : index
    %c0_19 = arith.constant 0 : index
    %25 = vector.load %arg7[%c0_18, %c0_19] : memref<128x128xbf16, #tpu.memory_space<vmem>>, vector<128x128xbf16>
    %c0_20 = arith.constant 0 : index
    %c0_21 = arith.constant 0 : index
    %26 = vector.load %arg8[%c0_20, %c0_21] : memref<1x128xf32, #tpu.memory_space<vmem>>, vector<1x128xf32>
    %cst_22 = arith.constant dense<0.000000e+00> : vector<8x128xf32>
    %27 = tpu.matmul %1, %25, %cst_22 {dimension_numbers = #tpu.dot_dimension_numbers<[1], [0], [0], [1], [0, 0, 1, 1], [], []>} : vector<8x128xbf16>, vector<128x128xbf16>, vector<8x128xf32> -> vector<8x128xf32>
    %28 = vector.broadcast %26 : vector<1x128xf32> to vector<8x128xf32>
    %29 = arith.addf %27, %28 : vector<8x128xf32>
    %30 = arith.addf %24, %29 : vector<8x128xf32>
    %c0_23 = arith.constant 0 : index
    %c0_24 = arith.constant 0 : index
    %31 = vector.load %arg11[%c0_23, %c0_24] : memref<8x128xf32, #tpu.memory_space<vmem>>, vector<8x128xf32>
    tpu.vector_store %arg11[%c0_23, %c0_24], %30 {strides = array<i32>} : memref<8x128xf32, #tpu.memory_space<vmem>>, vector<8x128xf32>,
    %c0_25 = arith.constant 0 : index
    %c0_26 = arith.constant 0 : index
    %32 = vector.load %arg9[%c0_25, %c0_26] : memref<128x128xbf16, #tpu.memory_space<vmem>>, vector<128x128xbf16>
    %c0_27 = arith.constant 0 : index
    %c0_28 = arith.constant 0 : index
    %33 = vector.load %arg10[%c0_27, %c0_28] : memref<1x128xf32, #tpu.memory_space<vmem>>, vector<1x128xf32>
    %34 = arith.truncf %30 : vector<8x128xf32> to vector<8x128xbf16>
    %cst_29 = arith.constant dense<0.000000e+00> : vector<8x128xf32>
    %35 = tpu.matmul %34, %32, %cst_29 {dimension_numbers = #tpu.dot_dimension_numbers<[1], [0], [0], [1], [0, 0, 1, 1], [], []>} : vector<8x128xbf16>, vector<128x128xbf16>, vector<8x128xf32> -> vector<8x128xf32>
    %36 = vector.broadcast %33 : vector<1x128xf32> to vector<8x128xf32>
    %37 = arith.addf %35, %36 : vector<8x128xf32>
    %c0_30 = arith.constant 0 : index
    %c0_31 = arith.constant 0 : index
    %38 = vector.load %arg12[%c0_30, %c0_31] : memref<8x128xf32, #tpu.memory_space<vmem>>, vector<8x128xf32>
    tpu.vector_store %arg12[%c0_30, %c0_31], %37 {strides = array<i32>} : memref<8x128xf32, #tpu.memory_space<vmem>>, vector<8x128xf32>,
    return
  }
}

</mosaic_0001>

<bundles_post_ra>
// kernel: tpu_custom_call.1
= control target key start
LH: loop header
LB: loop body
LE: loop exit
PB: predicated region body
PF: predicated region fallthrough
CT: control target
= control target key end

     0   :  { %18 = vsyncpa [#allocation3], 0  ;;  %s1408_s0 = inlined_call_operand.hbm [shape: f32[8,128], index: 0, kind: input, shape index: {}]   ;;  %s1409_s1 = inlined_call_operand.hbm [shape: bf16[128,128], index: 1, kind: input, shape index: {}]   ;;  %s1410_s2 = inlined_call_operand.vmem [shape: f32[1,128], index: 2, kind: input, shape index: {}]   ;;  %s1411_s3 = inlined_call_operand.hbm [shape: bf16[128,128], index: 3, kind: input, shape index: {}]   ;;  %s1412_s4 = inlined_call_operand.vmem [shape: f32[1,128], index: 4, kind: input, shape index: {}]   ;;  %s1413_s5 = inlined_call_operand.hbm [shape: bf16[128,128], index: 5, kind: input, shape index: {}]   ;;  %s1414_s6 = inlined_call_operand.vmem [shape: f32[1,128], index: 6, kind: input, shape index: {}]   ;;  %s1415_s7 = inlined_call_operand.hbm [shape: bf16[128,128], index: 7, kind: input, shape index: {}]   ;;  %s1416_s8 = inlined_call_operand.vmem [shape: f32[1,128], index: 8, kind: input, shape index: {}]   ;;  %s1417_s9 = inlined_call_operand.hbm [shape: bf16[128,128], index: 9, kind: input, shape index: {}]   ;;  %s1418_s10 = inlined_call_operand.vmem [shape: f32[1,128], index: 10, kind: input, shape index: {}]   ;;  %s1419_s11 = inlined_call_operand.hbm [shape: f32[8,128], index: 11, kind: output, shape index: {0}]   ;;  %s1420_s12 = inlined_call_operand.hbm [shape: f32[8,128], index: 12, kind: output, shape index: {1}]  }
   0x1   :  { %19 = vsyncpa [#allocation6], 0 }
   0x2   :  { %20 = vsyncpa [#allocation9], 0 }
   0x3   :  { %21 = vsyncpa [#allocation12], 0 }
   0x4   :  { %22 = vsyncpa [#allocation4], 0 }
   0x5   :  { %23 = vsyncpa [#allocation15], 0  ;;  %s1151_s21 = smov [#allocation5]   ;;  %s963_s25 = scalar_lea.hbm %s1409_s1, 1024 }
   0x6   :  { %s39_s22 = sshll.u32 %s1151_s21, 4  ;;  %p964_p0 = scmp.ne.s32.totalorder %s1409_s1, %s963_s25  ;;  %s40_s22 = int_to_ptr.vmem [resolvable:$true] %s39_s22 }
   0x7   :  { %p967_p1 = scmp.lt.u32.totalorder %s963_s25, %s1409_s1 }
   0x9   :  { %p969_p2 = pnand %p967_p1, %p964_p0 }
   0xb   :  { %972 = shalt.err (!%p969_p2)
}
   0xc   :  { %s973_s30 = scalar_lea.vmem %s40_s22, 1024  ;;  %p978_p4 = scmp.lt.s32.totalorder %s40_s22, %s40_s22 }
   0xd   :  { %p974_p3 = scmp.ne.s32.totalorder %s40_s22, %s973_s30  ;;  %p979_p5 = scmp.lt.s32.totalorder %s973_s30, %s973_s30 }
   0xf   :  { %p980_p6 = por %p979_p5, %p978_p4 }
  0x11   :  { %p981_p7 = pnand %p980_p6, %p974_p3 }
  0x13   :  { %984 = shalt.err (!%p981_p7)
}
  0x14   :  { %s1152_s13 = smov 64   ;;  %s1153_s14 = smov 4  }
  0x15   :  { %45 = dma.hbm_to_vmem [thread:$0]  %s1409_s1, 1024, %s40_s22, [#allocation6], %s1152_s13, %s1152_s13, %s1153_s14  }
  0x16   :  { %s1154_s17 = smov [#allocation8]   ;;  %s1155_s19 = smov [#allocation2]  }
  0x17   :  { %s67_s18 = sshll.u32 %s1154_s17, 4  ;;  %s30_s20 = sshll.u32 %s1155_s19, 4  ;;  %s68_s18 = int_to_ptr.vmem [resolvable:$true] %s67_s18  ;;  %s31_s20 = int_to_ptr.vmem [resolvable:$true] %s30_s20 }
  0x18   :  { %s985_s24 = scalar_lea.hbm %s1413_s5, 1024 }
  0x19   :  { %p986_p8 = scmp.ne.s32.totalorder %s1413_s5, %s985_s24  ;;  %p989_p9 = scmp.lt.u32.totalorder %s985_s24, %s1413_s5 }
  0x1b   :  { %p991_p10 = pnand %p989_p9, %p986_p8 }
  0x1d   :  { %994 = shalt.err (!%p991_p10)
}
  0x1e   :  { %s995_s1 = scalar_lea.vmem %s68_s18, 1024  ;;  %p1000_p12 = scmp.lt.s32.totalorder %s68_s18, %s68_s18 }
  0x1f   :  { %p996_p11 = scmp.ne.s32.totalorder %s68_s18, %s995_s1  ;;  %p1001_p13 = scmp.lt.s32.totalorder %s995_s1, %s995_s1 }
  0x21   :  { %p1002_p0 = por %p1001_p13, %p1000_p12 }
  0x23   :  { %p1003_p1 = pnand %p1002_p0, %p996_p11 }
  0x25   :  { %1006 = shalt.err (!%p1003_p1)
}
  0x26   :  { %73 = dma.hbm_to_vmem [thread:$0]  %s1413_s5, 1024, %s68_s18, [#allocation9], %s1152_s13, %s1152_s13, %s1153_s14  }
  0x27   :  { %s1007_s16 = scalar_lea.hbm %s1408_s0, 128 }
  0x28   :  { %p1008_p2 = scmp.ne.s32.totalorder %s1408_s0, %s1007_s16  ;;  %p1011_p3 = scmp.lt.u32.totalorder %s1007_s16, %s1408_s0 }
  0x2a   :  { %p1013_p4 = pnand %p1011_p3, %p1008_p2 }
  0x2c   :  { %1016 = shalt.err (!%p1013_p4)
}
  0x2d   :  { %s1017_s24 = scalar_lea.vmem %s31_s20, 128  ;;  %p1022_p6 = scmp.lt.s32.totalorder %s31_s20, %s31_s20 }
  0x2e   :  { %p1018_p5 = scmp.ne.s32.totalorder %s31_s20, %s1017_s24  ;;  %p1023_p7 = scmp.lt.s32.totalorder %s1017_s24, %s1017_s24 }
  0x30   :  { %p1024_p8 = por %p1023_p7, %p1022_p6 }
  0x32   :  { %p1025_p9 = pnand %p1024_p8, %p1018_p5 }
  0x34   :  { %1028 = shalt.err (!%p1025_p9)
}
  0x35   :  { %33 = dma.hbm_to_vmem [thread:$0]  %s1408_s0, 128, %s31_s20, [#allocation3]  }
  0x36   :  { %s1156_s25 = smov [#allocation7]   ;;  %s1157_s27 = smov [#allocation10]  }
  0x37   :  { %s53_s26 = sshll.u32 %s1156_s25, 4  ;;  %s81_s28 = sshll.u32 %s1157_s27, 4  ;;  %s54_s26 = int_to_ptr.vmem [resolvable:$true] %s53_s26  ;;  %s82_s28 = int_to_ptr.vmem [resolvable:$true] %s81_s28 }
  0x38   :  { %s1029_s29 = scalar_lea.hbm %s1411_s3, 1024 }
  0x39   :  { %p1030_p10 = scmp.ne.s32.totalorder %s1411_s3, %s1029_s29  ;;  %p1033_p11 = scmp.lt.u32.totalorder %s1029_s29, %s1411_s3 }
  0x3b   :  { %p1035_p12 = pnand %p1033_p11, %p1030_p10 }
  0x3d   :  { %1038 = shalt.err (!%p1035_p12)
}
  0x3e   :  { %s1039_s0 = scalar_lea.vmem %s54_s26, 1024  ;;  %p1044_p0 = scmp.lt.s32.totalorder %s54_s26, %s54_s26 }
  0x3f   :  { %p1040_p13 = scmp.ne.s32.totalorder %s54_s26, %s1039_s0  ;;  %p1045_p1 = scmp.lt.s32.totalorder %s1039_s0, %s1039_s0 }
  0x41   :  { %p1046_p2 = por %p1045_p1, %p1044_p0 }
  0x43   :  { %p1047_p3 = pnand %p1046_p2, %p1040_p13 }
  0x45   :  { %1050 = shalt.err (!%p1047_p3)
}
  0x46   :  { %59 = dma.hbm_to_vmem [thread:$0]  %s1411_s3, 1024, %s54_s26, [#allocation6], %s1152_s13, %s1152_s13, %s1153_s14  }
  0x47   :  { %s1051_s24 = scalar_lea.hbm %s1415_s7, 1024 }
  0x48   :  { %p1052_p4 = scmp.ne.s32.totalorder %s1415_s7, %s1051_s24  ;;  %p1055_p5 = scmp.lt.u32.totalorder %s1051_s24, %s1415_s7 }
  0x4a   :  { %p1057_p6 = pnand %p1055_p5, %p1052_p4 }
  0x4c   :  { %1060 = shalt.err (!%p1057_p6)
}
  0x4d   :  { %s1061_s1 = scalar_lea.vmem %s82_s28, 1024  ;;  %p1066_p8 = scmp.lt.s32.totalorder %s82_s28, %s82_s28 }
  0x4e   :  { %p1062_p7 = scmp.ne.s32.totalorder %s82_s28, %s1061_s1  ;;  %p1067_p9 = scmp.lt.s32.totalorder %s1061_s1, %s1061_s1 }
  0x50   :  { %p1068_p10 = por %p1067_p9, %p1066_p8 }
  0x52   :  { %p1069_p11 = pnand %p1068_p10, %p1062_p7 }
  0x54   :  { %1072 = shalt.err (!%p1069_p11)
}
  0x55   :  { %87 = dma.hbm_to_vmem [thread:$0]  %s1415_s7, 1024, %s82_s28, [#allocation9], %s1152_s13, %s1152_s13, %s1153_s14  }
  0x56   :  { %s1158_s22 = smov [#allocation11]   ;;  %s1073_s16 = scalar_lea.hbm %s1417_s9, 1024 }
  0x57   :  { %s95_s29 = sshll.u32 %s1158_s22, 4  ;;  %p1074_p12 = scmp.ne.s32.totalorder %s1417_s9, %s1073_s16  ;;  %s96_s29 = int_to_ptr.vmem [resolvable:$true] %s95_s29 }
  0x58   :  { %p1077_p13 = scmp.lt.u32.totalorder %s1073_s16, %s1417_s9 }
  0x5a   :  { %p1079_p0 = pnand %p1077_p13, %p1074_p12 }
  0x5c   :  { %1082 = shalt.err (!%p1079_p0)
}
  0x5d   :  { %s1083_s21 = scalar_lea.vmem %s96_s29, 1024  ;;  %p1088_p2 = scmp.lt.s32.totalorder %s96_s29, %s96_s29 }
  0x5e   :  { %p1084_p1 = scmp.ne.s32.totalorder %s96_s29, %s1083_s21  ;;  %p1089_p3 = scmp.lt.s32.totalorder %s1083_s21, %s1083_s21 }
  0x60   :  { %p1090_p4 = por %p1089_p3, %p1088_p2 }
  0x62   :  { %p1091_p5 = pnand %p1090_p4, %p1084_p1 }
  0x64   :  { %1094 = shalt.err (!%p1091_p5)
}
  0x65   :  { %101 = dma.hbm_to_vmem [thread:$0]  %s1417_s9, 1024, %s96_s29, [#allocation12], %s1152_s13, %s1152_s13, %s1153_s14  }
  0x66   :  { %1139 = dma.done.wait [#allocation3], 128  }
  0x67   :  { %1140 = vsyncadd [#allocation3], 4294967168 }
  0x68   :  { %1141 = dma.done.wait [#allocation6], 2048  }
  0x69   :  { %1142 = vsyncadd [#allocation6], 4294965248 }
  0x6a   :  { %1143 = dma.done.wait [#allocation9], 2048  }
  0x6b   :  { %1144 = vsyncadd [#allocation9], 4294965248 }
  0x6c   :  { %1145 = dma.done.wait [#allocation12], 1024  }
  0x6d   :  { %1146 = vsyncadd [#allocation12], 4294966272  ;;  %v1159_v0 = vmov 0.0   ;;  %vm1160_vm0 = vmmov 0   ;;  %v923_v1 = vld [vmem:[#allocation5] sm:$0xff]   ;;  %v924_v2 = vld [vmem:[#allocation5 + $0x8] sm:$0xff]  }
  0x6e   :  { %811 = vmatprep.subr.bf16.mxu0 %v1159_v0  ;;  %827 = vmatprep.mubr.msk.bf16.mxu0 %vm1160_vm0, %v1159_v0  ;;  %v925_v3 = vld [vmem:[#allocation5 + $0x10] sm:$0xff]   ;;  %v931_v4 = vld [vmem:[#allocation7] sm:$0xff]   ;;  %v926_v5 = vld [vmem:[#allocation5 + $0x18] sm:$0xff]   ;;  %s1161_s18 = smov [#allocation13]  }
  0x6f   :  { %831 = vmatprep.subr.bf16.mxu1 %v1159_v0  ;;  %847 = vmatprep.mubr.msk.bf16.mxu1 %vm1160_vm0, %v1159_v0  ;;  %v932_v6 = vld [vmem:[#allocation7 + $0x8] sm:$0xff]   ;;  %v927_v7 = vld [vmem:[#allocation5 + $0x20] sm:$0xff]   ;;  %v933_v8 = vld [vmem:[#allocation7 + $0x10] sm:$0xff]   ;;  %s695_s25 = sshll.u32 %s1161_s18, 4  ;;  %s696_s25 = int_to_ptr.vmem [resolvable:$true] %s695_s25 }
  0x70   :  { %812 = vmatpush3.bf16.msra.mxu0 %v923_v1  ;;  %832 = vmatpush3.bf16.msra.mxu1 %v931_v4  ;;  %v928_v9 = vld [vmem:[#allocation5 + $0x28] sm:$0xff]   ;;  %v934_v10 = vld [vmem:[#allocation7 + $0x18] sm:$0xff]   ;;  %v929_v11 = vld [vmem:[#allocation5 + $0x30] sm:$0xff]   ;;  %s1095_s27 = scalar_lea.vmem %s696_s25, 128  ;;  %p1100_p7 = scmp.lt.s32.totalorder %s696_s25, %s696_s25 }
  0x71   :  { %813 = vmatprep.subr.bf16.mxu0 %v1159_v0  ;;  %833 = vmatprep.subr.bf16.mxu1 %v1159_v0  ;;  %v935_v12 = vld [vmem:[#allocation7 + $0x20] sm:$0xff]   ;;  %v930_v13 = vld [vmem:[#allocation5 + $0x38] sm:$0xff]   ;;  %v936_v15 = vld [vmem:[#allocation7 + $0x28] sm:$0xff]   ;;  %p1096_p6 = scmp.ne.s32.totalorder %s696_s25, %s1095_s27  ;;  %p1101_p8 = scmp.lt.s32.totalorder %s1095_s27, %s1095_s27 }
  0x72   :  { %v123_v14 = vld [vmem:[#allocation2] sm:$0xff]  ;;  %v937_v17 = vld [vmem:[#allocation7 + $0x30] sm:$0xff]   ;;  %v940_v19 = vld [vmem:[#allocation8] sm:$0xff]  }
  0x73   :  { %v1333_v16 = vpack.c.bf16 %v123_v14, %v123_v14  ;;  %v938_v18 = vld [vmem:[#allocation7 + $0x38] sm:$0xff]   ;;  %v942_v20 = vld [vmem:[#allocation8 + $0x8] sm:$0xff]   ;;  %v944_v21 = vld [vmem:[#allocation8 + $0x10] sm:$0xff]   ;;  %p1102_p9 = por %p1101_p8, %p1100_p7 }
  0x74   :  { %814 = vmatpush3.bf16.msra.mxu0 %v924_v2  ;;  %834 = vmatpush3.bf16.msra.mxu1 %v932_v6  ;;  %v946_v22 = vld [vmem:[#allocation8 + $0x18] sm:$0xff]   ;;  %v948_v23 = vld [vmem:[#allocation8 + $0x20] sm:$0xff]   ;;  %v950_v24 = vld [vmem:[#allocation8 + $0x28] sm:$0xff]  }
  0x75   :  { %815 = vmatprep.subr.bf16.mxu0 %v1159_v0  ;;  %835 = vmatprep.subr.bf16.mxu1 %v1159_v0  ;;  %v721_v25 = vld [vmem:[%s1410_s2] ss:$0 sm:$0xff]  ;;  %v939_v32 = vld [vmem:[#allocation10] sm:$0xff]   ;;  %v941_v34 = vld [vmem:[#allocation10 + $0x8] sm:$0xff]   ;;  %p1103_p10 = pnand %p1102_p9, %p1096_p6 }
  0x76   :  { %v943_v35 = vld [vmem:[#allocation10 + $0x10] sm:$0xff]   ;;  %v945_v36 = vld [vmem:[#allocation10 + $0x18] sm:$0xff]   ;;  %v947_v37 = vld [vmem:[#allocation10 + $0x20] sm:$0xff]  }
  0x77   :  { %v949_v38 = vld [vmem:[#allocation10 + $0x28] sm:$0xff]   ;;  %v951_v39 = vld [vmem:[#allocation10 + $0x30] sm:$0xff]   ;;  %v953_v41 = vld [vmem:[#allocation10 + $0x38] sm:$0xff]  }
  0x78   :  { %816 = vmatpush3.bf16.msra.mxu0 %v925_v3  ;;  %836 = vmatpush3.bf16.msra.mxu1 %v933_v8  ;;  %v952_v40 = vld [vmem:[#allocation8 + $0x30] sm:$0xff]   ;;  %v954_v42 = vld [vmem:[#allocation8 + $0x38] sm:$0xff]   ;;  %v955_v50 = vld [vmem:[#allocation11] sm:$0xff]  }
  0x79   :  { %817 = vmatprep.subr.bf16.mxu0 %v1159_v0  ;;  %837 = vmatprep.subr.bf16.mxu1 %v1159_v0  ;;  %v730_v43 = vld [vmem:[%s1412_s4] ss:$0 sm:$0xff]  ;;  %v956_v52 = vld [vmem:[#allocation11 + $0x8] sm:$0xff]   ;;  %v957_v53 = vld [vmem:[#allocation11 + $0x10] sm:$0xff]  }
  0x7a   :  { %v958_v54 = vld [vmem:[#allocation11 + $0x18] sm:$0xff]   ;;  %v959_v55 = vld [vmem:[#allocation11 + $0x20] sm:$0xff]   ;;  %v960_v56 = vld [vmem:[#allocation11 + $0x28] sm:$0xff]  }
  0x7b   :  { %v961_v59 = vld [vmem:[#allocation11 + $0x30] sm:$0xff]   ;;  %v962_v62 = vld [vmem:[#allocation11 + $0x38] sm:$0xff]  }
  0x7c   :  { %818 = vmatpush3.bf16.msra.mxu0 %v926_v5  ;;  %838 = vmatpush3.bf16.msra.mxu1 %v934_v10  ;;  %v748_v63 = vld [vmem:[%s1416_s8] ss:$0 sm:$0xff] }
  0x7d   :  { %819 = vmatprep.subr.bf16.mxu0 %v1159_v0  ;;  %839 = vmatprep.subr.bf16.mxu1 %v1159_v0  ;;  %v739_v1 = vld [vmem:[%s1414_s6] ss:$0 sm:$0xff] }
  0x80   :  { %820 = vmatpush3.bf16.msra.mxu0 %v927_v7  ;;  %840 = vmatpush3.bf16.msra.mxu1 %v935_v12 }
  0x81   :  { %821 = vmatprep.subr.bf16.mxu0 %v1159_v0  ;;  %841 = vmatprep.subr.bf16.mxu1 %v1159_v0 }
  0x84   :  { %822 = vmatpush3.bf16.msra.mxu0 %v928_v9  ;;  %842 = vmatpush3.bf16.msra.mxu1 %v936_v15 }
  0x85   :  { %823 = vmatprep.subr.bf16.mxu0 %v1159_v0  ;;  %843 = vmatprep.subr.bf16.mxu1 %v1159_v0 }
  0x88   :  { %824 = vmatpush3.bf16.msra.mxu0 %v929_v11  ;;  %844 = vmatpush3.bf16.msra.mxu1 %v937_v17 }
  0x89   :  { %825 = vmatprep.subr.bf16.mxu0 %v1159_v0  ;;  %845 = vmatprep.subr.bf16.mxu1 %v1159_v0 }
  0x8c   :  { %826 = vmatpush3.bf16.msra.mxu0 %v930_v13  ;;  %846 = vmatpush3.bf16.msra.mxu1 %v938_v18 }
  0x8d   :  { %851 = vmatprep.subr.bf16.mxu0 %v1159_v0  ;;  %871 = vmatprep.subr.bf16.mxu1 %v1159_v0 }
  0x8f   :  { %828 = vmatmul.mubr.bf16.vlgmr.msra.gmra.mrb[0].mxu0 %v1333_v16 }
  0x90   :  { %867 = vmatprep.mubr.msk.bf16.mxu0 %vm1160_vm0, %v1159_v0  ;;  %852 = vmatpush3.bf16.msra.mxu0 %v940_v19 }
  0x91   :  { %853 = vmatprep.subr.bf16.mxu0 %v1159_v0 }
  0x94   :  { %854 = vmatpush3.bf16.msra.mxu0 %v942_v20 }
  0x95   :  { %855 = vmatprep.subr.bf16.mxu0 %v1159_v0 }
  0x98   :  { %856 = vmatpush3.bf16.msra.mxu0 %v944_v21 }
  0x99   :  { %857 = vmatprep.subr.bf16.mxu0 %v1159_v0 }
  0x9c   :  { %858 = vmatpush3.bf16.msra.mxu0 %v946_v22 }
  0x9d   :  { %859 = vmatprep.subr.bf16.mxu0 %v1159_v0 }
  0xa0   :  { %860 = vmatpush3.bf16.msra.mxu0 %v948_v23 }
  0xa1   :  { %861 = vmatprep.subr.bf16.mxu0 %v1159_v0 }
  0xa4   :  { %862 = vmatpush3.bf16.msra.mxu0 %v950_v24 }
  0xa5   :  { %863 = vmatprep.subr.bf16.mxu0 %v1159_v0 }
  0xa8   :  { %864 = vmatpush3.bf16.msra.mxu0 %v952_v40 }
  0xa9   :  { %865 = vmatprep.subr.bf16.mxu0 %v1159_v0 }
  0xac   :  { %866 = vmatpush3.bf16.msra.mxu0 %v954_v42 }
  0xad   :  { %891 = vmatprep.subr.bf16.mxu0 %v1159_v0 }
 0x162   :  { %v230_v26 = vpop.f32.mrb[0].mxu0 }
 0x163   :  { %v231_v27 = vadd.f32 %v721_v25, %v230_v26  ;;  %v829_v28 = vpop.f32.mrb[1].mxu0 }
 0x164   :  { %v233_v29 = vpop.f32.mrb[2].mxu0 }
 0x165   :  { %v236_v30 = vmax.f32 %v231_v27, 0.0  ;;  %v830_v31 = vpop.f32.mrb[3].mxu0 }
 0x167   :  { %v237_v33 = vpack.c.bf16 %v236_v30, %v236_v30 }
 0x169   :  { %848 = vmatmul.mubr.bf16.vlgmr.msra.gmra.mrb[0].mxu1 %v237_v33 }
 0x16a   :  { %872 = vmatpush3.bf16.msra.mxu1 %v939_v32  ;;  %887 = vmatprep.mubr.msk.bf16.mxu1 %vm1160_vm0, %v1159_v0 }
 0x16b   :  { %873 = vmatprep.subr.bf16.mxu1 %v1159_v0 }
 0x16e   :  { %874 = vmatpush3.bf16.msra.mxu1 %v941_v34 }
 0x16f   :  { %875 = vmatprep.subr.bf16.mxu1 %v1159_v0 }
 0x172   :  { %876 = vmatpush3.bf16.msra.mxu1 %v943_v35 }
 0x173   :  { %877 = vmatprep.subr.bf16.mxu1 %v1159_v0 }
 0x176   :  { %878 = vmatpush3.bf16.msra.mxu1 %v945_v36 }
 0x177   :  { %879 = vmatprep.subr.bf16.mxu1 %v1159_v0 }
 0x17a   :  { %880 = vmatpush3.bf16.msra.mxu1 %v947_v37 }
 0x17b   :  { %881 = vmatprep.subr.bf16.mxu1 %v1159_v0 }
 0x17e   :  { %882 = vmatpush3.bf16.msra.mxu1 %v949_v38 }
 0x17f   :  { %883 = vmatprep.subr.bf16.mxu1 %v1159_v0 }
 0x182   :  { %884 = vmatpush3.bf16.msra.mxu1 %v951_v39 }
 0x183   :  { %885 = vmatprep.subr.bf16.mxu1 %v1159_v0 }
 0x186   :  { %886 = vmatpush3.bf16.msra.mxu1 %v953_v41 }
 0x189   :  { %888 = vmatmul.mubr.bf16.vlgmr.msra.gmra.mrb[4].mxu1 %v1333_v16 }
 0x23c   :  { %v343_v44 = vpop.f32.mrb[0].mxu1 }
 0x23d   :  { %v344_v45 = vadd.f32 %v730_v43, %v343_v44  ;;  %v849_v46 = vpop.f32.mrb[1].mxu1 }
 0x23e   :  { %v346_v47 = vpop.f32.mrb[2].mxu1 }
 0x23f   :  { %v349_v48 = vmax.f32 %v344_v45, 0.0  ;;  %v850_v49 = vpop.f32.mrb[3].mxu1 }
 0x241   :  { %v350_v51 = vpack.c.bf16 %v349_v48, %v349_v48 }
 0x243   :  { %868 = vmatmul.mubr.bf16.vlgmr.msra.gmra.mrb[4].mxu0 %v350_v51 }
 0x244   :  { %892 = vmatpush3.bf16.msra.mxu0 %v955_v50  ;;  %907 = vmatprep.mubr.msk.bf16.mxu0 %vm1160_vm0, %v1159_v0 }
 0x245   :  { %893 = vmatprep.subr.bf16.mxu0 %v1159_v0 }
 0x248   :  { %894 = vmatpush3.bf16.msra.mxu0 %v956_v52 }
 0x249   :  { %895 = vmatprep.subr.bf16.mxu0 %v1159_v0 }
 0x24c   :  { %896 = vmatpush3.bf16.msra.mxu0 %v957_v53 }
 0x24d   :  { %897 = vmatprep.subr.bf16.mxu0 %v1159_v0 }
 0x250   :  { %898 = vmatpush3.bf16.msra.mxu0 %v958_v54 }
 0x251   :  { %899 = vmatprep.subr.bf16.mxu0 %v1159_v0 }
 0x254   :  { %900 = vmatpush3.bf16.msra.mxu0 %v959_v55 }
 0x255   :  { %901 = vmatprep.subr.bf16.mxu0 %v1159_v0 }
 0x258   :  { %902 = vmatpush3.bf16.msra.mxu0 %v960_v56 }
 0x259   :  { %903 = vmatprep.subr.bf16.mxu0 %v1159_v0 }
 0x25c   :  { %v568_v57 = vpop.f32.mrb[4].mxu1  ;;  %904 = vmatpush3.bf16.msra.mxu0 %v961_v59 }
 0x25d   :  { %v889_v58 = vpop.f32.mrb[5].mxu1  ;;  %905 = vmatprep.subr.bf16.mxu0 %v1159_v0  ;;  %v569_v3 = vadd.f32 %v748_v63, %v568_v57 }
 0x25e   :  { %v571_v60 = vpop.f32.mrb[6].mxu1 }
 0x25f   :  { %v890_v61 = vpop.f32.mrb[7].mxu1 }
 0x260   :  { %906 = vmatpush3.bf16.msra.mxu0 %v962_v62 }
 0x316   :  { %v456_v2 = vpop.f32.mrb[4].mxu0 }
 0x317   :  { %v457_v4 = vadd.f32 %v739_v1, %v456_v2  ;;  %v869_v5 = vpop.f32.mrb[5].mxu0 }
 0x318   :  { %v459_v6 = vpop.f32.mrb[6].mxu0 }
 0x319   :  { %v462_v7 = vmax.f32 %v457_v4, 0.0  ;;  %v870_v8 = vpop.f32.mrb[7].mxu0 }
 0x31b   :  { %v574_v9 = vadd.f32 %v569_v3, %v462_v7 }
 0x31d   :  { %v593_v10 = vpack.c.bf16 %v574_v9, %v574_v9  ;;  %575 = vst [vmem:[#allocation13] sm:$0xff] %v574_v9 }
 0x31f   :  { %908 = vmatmul.mubr.bf16.vlgmr.msra.gmra.mrb[8].mxu0 %v593_v10 }
 0x320   :  { %1106 = shalt.err (!%p1103_p10)
}
 0x321   :  { %s1107_s1 = scalar_lea.hbm %s1419_s11, 128 }
 0x322   :  { %p1108_p11 = scmp.ne.s32.totalorder %s1419_s11, %s1107_s1  ;;  %p1111_p12 = scmp.lt.u32.totalorder %s1107_s1, %s1419_s11 }
 0x324   :  { %p1113_p13 = pnand %p1111_p12, %p1108_p11 }
 0x326   :  { %1116 = shalt.err (!%p1113_p13)
}
 0x327   :  { %698 = dma.vmem_to_hbm [thread:$0]  %s696_s25, 128, %s1419_s11, [#allocation4]   ;;  %v757_v0 = vld [vmem:[%s1418_s10] ss:$0 sm:$0xff] }
 0x328   :  { %s1162_s0 = smov [#allocation14]  }
 0x329   :  { %s705_s20 = sshll.u32 %s1162_s0, 4  ;;  %s706_s20 = int_to_ptr.vmem [resolvable:$true] %s705_s20 }
 0x32a   :  { %s1117_s19 = scalar_lea.vmem %s706_s20, 128  ;;  %p1122_p1 = scmp.lt.s32.totalorder %s706_s20, %s706_s20 }
 0x32b   :  { %p1118_p0 = scmp.ne.s32.totalorder %s706_s20, %s1117_s19  ;;  %p1123_p2 = scmp.lt.s32.totalorder %s1117_s19, %s1117_s19 }
 0x32d   :  { %p1124_p3 = por %p1123_p2, %p1122_p1 }
 0x32f   :  { %p1125_p4 = pnand %p1124_p3, %p1118_p0 }
 0x3f2   :  { %v682_v11 = vpop.f32.mrb[8].mxu0 }
 0x3f3   :  { %v683_v12 = vadd.f32 %v757_v0, %v682_v11  ;;  %v909_v13 = vpop.f32.mrb[9].mxu0 }
 0x3f4   :  { %v685_v14 = vpop.f32.mrb[10].mxu0 }
 0x3f5   :  { %688 = vst [vmem:[#allocation14] sm:$0xff] %v683_v12  ;;  %v910_v15 = vpop.f32.mrb[11].mxu0 }
 0x3f6   :  { %1128 = shalt.err (!%p1125_p4)
}
 0x3f7   :  { %s1129_s10 = scalar_lea.hbm %s1420_s12, 128 }
 0x3f8   :  { %p1130_p5 = scmp.ne.s32.totalorder %s1420_s12, %s1129_s10  ;;  %p1133_p6 = scmp.lt.u32.totalorder %s1129_s10, %s1420_s12 }
 0x3fa   :  { %p1135_p7 = pnand %p1133_p6, %p1130_p5 }
 0x3fc   :  { %1138 = shalt.err (!%p1135_p7)
}
 0x3fd   :  { %708 = dma.vmem_to_hbm [thread:$0]  %s706_s20, 128, %s1420_s12, [#allocation15]  }
 0x3fe   :  { %1147 = dma.done.wait [#allocation4], 128  }
 0x3ff   :  { %1148 = vsyncadd [#allocation4], 4294967168 }
 0x400   :  { %1149 = dma.done.wait [#allocation15], 128  }
 0x401   :  { %1150 = vsyncadd [#allocation15], 4294967168 }
 0x402   :  { %715 = vsyncpa [#allocation3], 1 }
 0x403   :  { %716 = vsyncpa [#allocation6], 1 }
 0x404   :  { %717 = vsyncpa [#allocation9], 1 }
 0x405   :  { %718 = vsyncpa [#allocation12], 1 }
 0x406   :  { %719 = vsyncpa [#allocation4], 1 }
 0x407   :  { %720 = vsyncpa [#allocation15], 1 }

</bundles_post_ra>
